<compile_context>
chip_gen: v7x
topology: tpu7x:2x2x1
jax: 0.10.0
libtpu: 0.0.40
codegen_flags: <defaults>
</compile_context>

<pallas_src>
import jax
import jax.numpy as jnp
from jax.experimental import pallas as pl
from jax.experimental.pallas import tpu as pltpu


def _round_up(x, m):
    return ((x + m - 1) // m) * m


def _use_blkdiag_q():
    """True on chips with 256x256 MXUs (v6e / v7x); False on v5e / v4-class."""
    try:
        kind = jax.devices()[0].device_kind.lower()
    except Exception:
        return True
    if "v5" in kind or "v4" in kind or "v3" in kind or "v2" in kind:
        return False
    return True


def _make_fusion_kernel(use_blkdiag_q, a_pad):
    A = a_pad

    def kernel(md1_ref, md2_ref, w1_ref, b1_ref, w2_ref, b2_ref,
               wk_ref, wq_ref, bq_ref, out_ref):
        # Input projections: two small dots, one per modality (no host concat).
        h1 = jnp.dot(md1_ref[...], w1_ref[...],
                     preferred_element_type=jnp.float32) + b1_ref[...]   # (TB, A)
        h2 = jnp.dot(md2_ref[...], w2_ref[...],
                     preferred_element_type=jnp.float32) + b2_ref[...]   # (TB, A)

        # Attention logits: VPU multiply + lane reduction against wk as a row.
        # bk is omitted: a scalar shared by both logits cancels in the softmax.
        wk = wk_ref[...]                                                 # (1, A)
        s1 = jnp.sum(jnp.tanh(h1) * wk, axis=-1, keepdims=True)          # (TB, 1)
        s2 = jnp.sum(jnp.tanh(h2) * wk, axis=-1, keepdims=True)          # (TB, 1)

        # Exact 2-way softmax (a2 = 1 - a1 keeps normalization exact).
        m = jnp.maximum(s1, s2)
        e1 = jnp.exp(s1 - m)
        e2 = jnp.exp(s2 - m)
        a1 = e1 / (e1 + e2)
        a2 = 1.0 - a1

        if use_blkdiag_q:
            # v6e / v7x: lane-dense (TB, 2A) @ blkdiag(wq, wq) fills the
            # 256x256 MXU (K = N = 2A); concat at a 128-lane boundary is free.
            h = jnp.concatenate([h1, h2], axis=-1)                       # (TB, 2A)
            q = jnp.tanh(jnp.dot(h, wq_ref[...],
                                 preferred_element_type=jnp.float32)
                         + bq_ref[...])                                  # (TB, 2A)
            out = a1 * q[:, :A] + a2 * q[:, A:]
        else:
            # v5e: (TB, A) @ (A, A) is already a perfect 128x128 MXU fit.
            q1 = jnp.tanh(jnp.dot(h1, wq_ref[...],
                                  preferred_element_type=jnp.float32) + bq_ref[...])
            q2 = jnp.tanh(jnp.dot(h2, wq_ref[...],
                                  preferred_element_type=jnp.float32) + bq_ref[...])
            out = a1 * q1 + a2 * q2

        # bmm((B,1,2), (B,2,A)).squeeze()  ==  a1*q1 + a2*q2
        out_ref[...] = out.astype(out_ref.dtype)

    return kernel


def prepare_params(params, *, lane=128):
    """One-time host-side weight prep (hoisted out of the per-call path):
    pad the attention dim to a multiple of 128 lanes and precompute the
    block-diagonal wq / duplicated bq used on v6e / v7x."""
    A = params["wq"].shape[1]
    Ap = _round_up(A, lane)
    dtype = params["wq"].dtype

    def pad_cols(x, n):
        return jnp.pad(x, ((0, 0), (0, n - x.shape[1])))

    w1 = pad_cols(params["w1"], Ap)
    w2 = pad_cols(params["w2"], Ap)
    b1 = pad_cols(params["b1"], Ap)
    b2 = pad_cols(params["b2"], Ap)
    wk = pad_cols(params["wk"].reshape(1, A), Ap)
    wq = jnp.pad(params["wq"], ((0, Ap - A), (0, Ap - A)))
    bq = pad_cols(params["bq"], Ap)

    # blkdiag(wq, wq) and [bq | bq] for the lane-dense linear_q on v6e/v7x.
    wq_blk = jnp.zeros((2 * Ap, 2 * Ap), dtype)
    wq_blk = wq_blk.at[:Ap, :Ap].set(wq).at[Ap:, Ap:].set(wq)
    bq2 = jnp.concatenate([bq, bq], axis=1)

    # NOTE: bk is intentionally not carried along -- it cancels exactly in the
    # 2-way softmax over the two linear_k logits.
    return dict(w1=w1, b1=b1, w2=w2, b2=b2, wk=wk,
                wq=wq, bq=bq, wq_blk=wq_blk, bq2=bq2, A=A, Ap=Ap)


def modality_fusion(md1_vec, md2_vec, prepared, *, block_b=1024):
    """Pallas-backed ModalityFusion forward. Returns (B, attention_size)."""
    B, D1 = md1_vec.shape
    _, D2 = md2_vec.shape
    A, Ap = prepared["A"], prepared["Ap"]
    out_dtype = md1_vec.dtype

    use_blkdiag = _use_blkdiag_q()

    # Batch tile: as large as possible to amortize the ~0.35us per-grid-step
    # overhead, but aim for >= 4 steps when B is large enough (v7x megacore
    # sharding + DMA pipelining) and keep batch padding within one tile.
    TB = min(block_b, max(8, _round_up(pl.cdiv(B, 4), 8)))
    Bp = _round_up(B, TB)
    if Bp != B:
        md1_vec = jnp.pad(md1_vec, ((0, Bp - B), (0, 0)))
        md2_vec = jnp.pad(md2_vec, ((0, Bp - B), (0, 0)))
    grid = (Bp // TB,)

    if use_blkdiag:
        wq_arg, bq_arg = prepared["wq_blk"], prepared["bq2"]
        wq_shape, bq_shape = (2 * Ap, 2 * Ap), (1, 2 * Ap)
    else:
        wq_arg, bq_arg = prepared["wq"], prepared["bq"]
        wq_shape, bq_shape = (Ap, Ap), (1, Ap)

    kernel = _make_fusion_kernel(use_blkdiag, Ap)

    out = pl.pallas_call(
        kernel,
        grid=grid,
        in_specs=[
            pl.BlockSpec((TB, D1), lambda i: (i, 0)),       # md1 tile
            pl.BlockSpec((TB, D2), lambda i: (i, 0)),       # md2 tile
            pl.BlockSpec((D1, Ap), lambda i: (0, 0)),       # w1 (held in VMEM)
            pl.BlockSpec((1, Ap), lambda i: (0, 0)),        # b1
            pl.BlockSpec((D2, Ap), lambda i: (0, 0)),       # w2
            pl.BlockSpec((1, Ap), lambda i: (0, 0)),        # b2
            pl.BlockSpec((1, Ap), lambda i: (0, 0)),        # wk row
            pl.BlockSpec(wq_shape, lambda i: (0, 0)),       # wq or blkdiag(wq,wq)
            pl.BlockSpec(bq_shape, lambda i: (0, 0)),       # bq or [bq|bq]
        ],
        out_specs=pl.BlockSpec((TB, Ap), lambda i: (i, 0)),
        out_shape=jax.ShapeDtypeStruct((Bp, Ap), out_dtype),
        compiler_params=pltpu.CompilerParams(
            dimension_semantics=("parallel",),
            vmem_limit_bytes=32 * 1024 * 1024,
        ),
    )(md1_vec, md2_vec, prepared["w1"], prepared["b1"], prepared["w2"],
      prepared["b2"], prepared["wk"], wq_arg, bq_arg)

    if Bp != B:
        out = out[:B]
    if Ap != A:
        out = out[:, :A]
    return out


def _reference(md1_vec, md2_vec, p):
    """Pure-JAX reference mirroring the PyTorch forward (includes bk)."""
    md1_out = md1_vec @ p["w1"] + p["b1"]
    md2_out = md2_vec @ p["w2"] + p["b2"]
    s1 = jnp.tanh(md1_out) @ p["wk"] + p["bk"]
    s2 = jnp.tanh(md2_out) @ p["wk"] + p["bk"]
    scores = jax.nn.softmax(jnp.concatenate([s1, s2], axis=1), axis=-1)[:, None, :]
    q1 = jnp.tanh(md1_out @ p["wq"] + p["bq"])
    q2 = jnp.tanh(md2_out @ p["wq"] + p["bq"])
    md_vecs = jnp.stack([q1, q2], axis=1)                          # (B, 2, A)
    return jnp.einsum("bij,bja->ba", scores, md_vecs)              # squeeze of (B,1,A)


def init_params(key, md1_dim, md2_dim, attention_size):
    ks = jax.random.split(key, 8)

    def lin(kw, kb, fan_in, fan_out):
        bound = 1.0 / jnp.sqrt(fan_in)
        w = jax.random.uniform(kw, (fan_in, fan_out), jnp.float32, -bound, bound)
        b = jax.random.uniform(kb, (1, fan_out), jnp.float32, -bound, bound)
        return w, b

    w1, b1 = lin(ks[0], ks[1], md1_dim, attention_size)
    w2, b2 = lin(ks[2], ks[3], md2_dim, attention_size)
    wk, bk = lin(ks[4], ks[5], attention_size, 1)
    wq, bq = lin(ks[6], ks[7], attention_size, attention_size)
    return dict(w1=w1, b1=b1, w2=w2, b2=b2, wk=wk, bk=bk, wq=wq, bq=bq)


if __name__ == "__main__":
    key = jax.random.PRNGKey(0)
    B, MD1, MD2, A = 8, 16, 24, 128

    k1, k2, k3 = jax.random.split(key, 3)
    md1 = jax.random.normal(k1, (B, MD1), jnp.float32)
    md2 = jax.random.normal(k2, (B, MD2), jnp.float32)
    params = init_params(k3, MD1, MD2, A)

    prepared = prepare_params(params)          # one-time weight prep (hoisted)
    out = modality_fusion(md1, md2, prepared)
    out = jax.block_until_ready(out)

    ref = _reference(md1, md2, params)
    assert out.shape == (B, A)
    # Tolerance covers default MXU f32 matmul precision on TPU.
    assert jnp.allclose(out, ref, atol=2e-3, rtol=2e-3), "mismatch vs reference"

    print("KERNEL_OK")
</pallas_src>

<mosaic_0001>
module attributes {stable_mosaic.version = 11 : i64} {
  func.func @kernel(%arg0: i32, %arg1: memref<8x16xf32, #tpu.memory_space<vmem>>, %arg2: memref<8x24xf32, #tpu.memory_space<vmem>>, %arg3: memref<16x128xf32, #tpu.memory_space<vmem>>, %arg4: memref<1x128xf32, #tpu.memory_space<vmem>>, %arg5: memref<24x128xf32, #tpu.memory_space<vmem>>, %arg6: memref<1x128xf32, #tpu.memory_space<vmem>>, %arg7: memref<1x128xf32, #tpu.memory_space<vmem>>, %arg8: memref<256x256xf32, #tpu.memory_space<vmem>>, %arg9: memref<1x256xf32, #tpu.memory_space<vmem>>, %arg10: memref<8x128xf32, #tpu.memory_space<vmem>>) attributes {dimension_semantics = [#tpu.dimension_semantics<parallel>], iteration_bounds = array<i64: 1>, scalar_prefetch = 0 : i64, scratch_operands = 0 : i64, tpu.core_type = #tpu.core_type<tc>, window_params = [{transform_indices = @transform_0, window_bounds = array<i64: 8, 16>}, {transform_indices = @transform_1, window_bounds = array<i64: 8, 24>}, {pipeline_mode = #tpu.pipeline_mode<synchronous>, transform_indices = @transform_2, window_bounds = array<i64: 16, 128>}, {pipeline_mode = #tpu.pipeline_mode<synchronous>, transform_indices = @transform_3, window_bounds = array<i64: 1, 128>}, {pipeline_mode = #tpu.pipeline_mode<synchronous>, transform_indices = @transform_4, window_bounds = array<i64: 24, 128>}, {pipeline_mode = #tpu.pipeline_mode<synchronous>, transform_indices = @transform_5, window_bounds = array<i64: 1, 128>}, {pipeline_mode = #tpu.pipeline_mode<synchronous>, transform_indices = @transform_6, window_bounds = array<i64: 1, 128>}, {pipeline_mode = #tpu.pipeline_mode<synchronous>, transform_indices = @transform_7, window_bounds = array<i64: 256, 256>}, {pipeline_mode = #tpu.pipeline_mode<synchronous>, transform_indices = @transform_8, window_bounds = array<i64: 1, 256>}, {transform_indices = @transform_9, window_bounds = array<i64: 8, 128>}]} {
    %c0 = arith.constant 0 : index
    %c0_0 = arith.constant 0 : index
    %0 = vector.load %arg1[%c0, %c0_0] : memref<8x16xf32, #tpu.memory_space<vmem>>, vector<8x16xf32>
    %c0_1 = arith.constant 0 : index
    %c0_2 = arith.constant 0 : index
    %1 = vector.load %arg3[%c0_1, %c0_2] : memref<16x128xf32, #tpu.memory_space<vmem>>, vector<16x128xf32>
    %cst = arith.constant dense<0.000000e+00> : vector<8x128xf32>
    %2 = tpu.matmul %0, %1, %cst {dimension_numbers = #tpu.dot_dimension_numbers<[1], [0], [0], [1], [0, 0, 1, 1], [], []>} : vector<8x16xf32>, vector<16x128xf32>, vector<8x128xf32> -> vector<8x128xf32>
    %c0_3 = arith.constant 0 : index
    %c0_4 = arith.constant 0 : index
    %3 = vector.load %arg4[%c0_3, %c0_4] : memref<1x128xf32, #tpu.memory_space<vmem>>, vector<1x128xf32>
    %4 = vector.broadcast %3 : vector<1x128xf32> to vector<8x128xf32>
    %5 = arith.addf %2, %4 : vector<8x128xf32>
    %c0_5 = arith.constant 0 : index
    %c0_6 = arith.constant 0 : index
    %6 = vector.load %arg2[%c0_5, %c0_6] : memref<8x24xf32, #tpu.memory_space<vmem>>, vector<8x24xf32>
    %c0_7 = arith.constant 0 : index
    %c0_8 = arith.constant 0 : index
    %7 = vector.load %arg5[%c0_7, %c0_8] : memref<24x128xf32, #tpu.memory_space<vmem>>, vector<24x128xf32>
    %cst_9 = arith.constant dense<0.000000e+00> : vector<8x128xf32>
    %8 = tpu.matmul %6, %7, %cst_9 {dimension_numbers = #tpu.dot_dimension_numbers<[1], [0], [0], [1], [0, 0, 1, 1], [], []>} : vector<8x24xf32>, vector<24x128xf32>, vector<8x128xf32> -> vector<8x128xf32>
    %c0_10 = arith.constant 0 : index
    %c0_11 = arith.constant 0 : index
    %9 = vector.load %arg6[%c0_10, %c0_11] : memref<1x128xf32, #tpu.memory_space<vmem>>, vector<1x128xf32>
    %10 = vector.broadcast %9 : vector<1x128xf32> to vector<8x128xf32>
    %11 = arith.addf %8, %10 : vector<8x128xf32>
    %c0_12 = arith.constant 0 : index
    %c0_13 = arith.constant 0 : index
    %12 = vector.load %arg7[%c0_12, %c0_13] : memref<1x128xf32, #tpu.memory_space<vmem>>, vector<1x128xf32>
    %13 = math.tanh %5 : vector<8x128xf32>
    %14 = vector.broadcast %12 : vector<1x128xf32> to vector<8x128xf32>
    %15 = arith.mulf %13, %14 : vector<8x128xf32>
    %cst_14 = arith.constant dense<0.000000e+00> : vector<8xf32>
    %16 = vector.multi_reduction <add>, %15, %cst_14 [1] : vector<8x128xf32> to vector<8xf32>
    %17 = vector.shape_cast %16 : vector<8xf32> to vector<8x1xf32>
    %18 = math.tanh %11 : vector<8x128xf32>
    %19 = vector.broadcast %12 : vector<1x128xf32> to vector<8x128xf32>
    %20 = arith.mulf %18, %19 : vector<8x128xf32>
    %cst_15 = arith.constant dense<0.000000e+00> : vector<8xf32>
    %21 = vector.multi_reduction <add>, %20, %cst_15 [1] : vector<8x128xf32> to vector<8xf32>
    %22 = vector.shape_cast %21 : vector<8xf32> to vector<8x1xf32>
    %23 = arith.maximumf %17, %22 : vector<8x1xf32>
    %24 = arith.subf %17, %23 : vector<8x1xf32>
    %25 = math.exp %24 : vector<8x1xf32>
    %26 = arith.subf %22, %23 : vector<8x1xf32>
    %27 = math.exp %26 : vector<8x1xf32>
    %28 = arith.addf %25, %27 : vector<8x1xf32>
    %29 = arith.divf %25, %28 : vector<8x1xf32>
    %cst_16 = arith.constant 1.000000e+00 : f32
    %30 = vector.broadcast %cst_16 : f32 to vector<8x1xf32>
    %31 = arith.subf %30, %29 : vector<8x1xf32>
    %32 = tpu.concatenate %5, %11 in 1 : vector<8x128xf32>, vector<8x128xf32> -> vector<8x256xf32>
    %c0_17 = arith.constant 0 : index
    %c0_18 = arith.constant 0 : index
    %33 = vector.load %arg8[%c0_17, %c0_18] : memref<256x256xf32, #tpu.memory_space<vmem>>, vector<256x256xf32>
    %cst_19 = arith.constant dense<0.000000e+00> : vector<8x256xf32>
    %34 = tpu.matmul %32, %33, %cst_19 {dimension_numbers = #tpu.dot_dimension_numbers<[1], [0], [0], [1], [0, 0, 1, 1], [], []>} : vector<8x256xf32>, vector<256x256xf32>, vector<8x256xf32> -> vector<8x256xf32>
    %c0_20 = arith.constant 0 : index
    %c0_21 = arith.constant 0 : index
    %35 = vector.load %arg9[%c0_20, %c0_21] : memref<1x256xf32, #tpu.memory_space<vmem>>, vector<1x256xf32>
    %36 = vector.broadcast %35 : vector<1x256xf32> to vector<8x256xf32>
    %37 = arith.addf %34, %36 : vector<8x256xf32>
    %38 = math.tanh %37 : vector<8x256xf32>
    %39 = vector.extract_strided_slice %38 {offsets = [0, 0], sizes = [8, 128], strides = [1, 1]} : vector<8x256xf32> to vector<8x128xf32>
    %40 = vector.broadcast %29 : vector<8x1xf32> to vector<8x128xf32>
    %41 = arith.mulf %40, %39 : vector<8x128xf32>
    %42 = vector.extract_strided_slice %38 {offsets = [0, 128], sizes = [8, 128], strides = [1, 1]} : vector<8x256xf32> to vector<8x128xf32>
    %43 = vector.broadcast %31 : vector<8x1xf32> to vector<8x128xf32>
    %44 = arith.mulf %43, %42 : vector<8x128xf32>
    %45 = arith.addf %41, %44 : vector<8x128xf32>
    %c0_22 = arith.constant 0 : index
    %c0_23 = arith.constant 0 : index
    %46 = vector.load %arg10[%c0_22, %c0_23] : memref<8x128xf32, #tpu.memory_space<vmem>>, vector<8x128xf32>
    tpu.vector_store %arg10[%c0_22, %c0_23], %45 {strides = array<i32>} : memref<8x128xf32, #tpu.memory_space<vmem>>, vector<8x128xf32>,
    return
  }
  func.func @transform_0(%arg0: i32) -> (i32, i32) {
    %c0_i32 = arith.constant 0 : i32
    %c0_i32_0 = arith.constant 0 : i32
    return %arg0, %c0_i32 : i32, i32
  }
  func.func @transform_1(%arg0: i32) -> (i32, i32) {
    %c0_i32 = arith.constant 0 : i32
    %c0_i32_0 = arith.constant 0 : i32
    return %arg0, %c0_i32 : i32, i32
  }
  func.func @transform_2(%arg0: i32) -> (i32, i32) {
    %c0_i32 = arith.constant 0 : i32
    %c0_i32_0 = arith.constant 0 : i32
    %c0_i32_1 = arith.constant 0 : i32
    return %c0_i32, %c0_i32_0 : i32, i32
  }
  func.func @transform_3(%arg0: i32) -> (i32, i32) {
    %c0_i32 = arith.constant 0 : i32
    %c0_i32_0 = arith.constant 0 : i32
    %c0_i32_1 = arith.constant 0 : i32
    return %c0_i32, %c0_i32_0 : i32, i32
  }
  func.func @transform_4(%arg0: i32) -> (i32, i32) {
    %c0_i32 = arith.constant 0 : i32
    %c0_i32_0 = arith.constant 0 : i32
    %c0_i32_1 = arith.constant 0 : i32
    return %c0_i32, %c0_i32_0 : i32, i32
  }
  func.func @transform_5(%arg0: i32) -> (i32, i32) {
    %c0_i32 = arith.constant 0 : i32
    %c0_i32_0 = arith.constant 0 : i32
    %c0_i32_1 = arith.constant 0 : i32
    return %c0_i32, %c0_i32_0 : i32, i32
  }
  func.func @transform_6(%arg0: i32) -> (i32, i32) {
    %c0_i32 = arith.constant 0 : i32
    %c0_i32_0 = arith.constant 0 : i32
    %c0_i32_1 = arith.constant 0 : i32
    return %c0_i32, %c0_i32_0 : i32, i32
  }
  func.func @transform_7(%arg0: i32) -> (i32, i32) {
    %c0_i32 = arith.constant 0 : i32
    %c0_i32_0 = arith.constant 0 : i32
    %c0_i32_1 = arith.constant 0 : i32
    return %c0_i32, %c0_i32_0 : i32, i32
  }
  func.func @transform_8(%arg0: i32) -> (i32, i32) {
    %c0_i32 = arith.constant 0 : i32
    %c0_i32_0 = arith.constant 0 : i32
    %c0_i32_1 = arith.constant 0 : i32
    return %c0_i32, %c0_i32_0 : i32, i32
  }
  func.func @transform_9(%arg0: i32) -> (i32, i32) {
    %c0_i32 = arith.constant 0 : i32
    %c0_i32_0 = arith.constant 0 : i32
    return %arg0, %c0_i32 : i32, i32
  }
}

</mosaic_0001>

<bundles_post_ra>
// kernel: tpu_custom_call.1
= control target key start
LH: loop header
LB: loop body
LE: loop exit
PB: predicated region body
PF: predicated region fallthrough
CT: control target
= control target key end

     0   :  { %14 = vsyncpa [#allocation3], 0  ;;  %s882_s0 = inlined_call_operand.hbm [shape: f32[8,16], index: 0, kind: input, shape index: {}]   ;;  %s883_s1 = inlined_call_operand.hbm [shape: f32[8,24], index: 1, kind: input, shape index: {}]   ;;  %s884_s2 = inlined_call_operand.hbm [shape: f32[16,128], index: 2, kind: input, shape index: {}]   ;;  %s885_s3 = inlined_call_operand.vmem [shape: f32[1,128], index: 3, kind: input, shape index: {}]   ;;  %s886_s4 = inlined_call_operand.hbm [shape: f32[24,128], index: 4, kind: input, shape index: {}]   ;;  %s887_s5 = inlined_call_operand.vmem [shape: f32[1,128], index: 5, kind: input, shape index: {}]   ;;  %s888_s6 = inlined_call_operand.vmem [shape: f32[1,128], index: 6, kind: input, shape index: {}]   ;;  %s889_s7 = inlined_call_operand.hbm [shape: f32[256,256], index: 7, kind: input, shape index: {}]   ;;  %s890_s8 = inlined_call_operand.vmem [shape: f32[1,256], index: 8, kind: input, shape index: {}]   ;;  %s891_s9 = inlined_call_operand.hbm [shape: f32[8,128], index: 9, kind: output, shape index: {}]  }
   0x1   :  { %15 = vsyncpa [#allocation6], 0 }
   0x2   :  { %16 = vsyncpa [#allocation9], 0 }
   0x3   :  { %17 = vsyncpa [#allocation4], 0  ;;  %s727_s30 = smov [#allocation5]   ;;  %s587_s13 = scalar_lea.hbm %s883_s1, 128 }
   0x4   :  { %s34_s10 = sshll.u32 %s727_s30, 4  ;;  %p588_p0 = scmp.ne.s32.totalorder %s883_s1, %s587_s13  ;;  %s35_s10 = int_to_ptr.vmem [resolvable:$true] %s34_s10 }
   0x5   :  { %p591_p1 = scmp.lt.u32.totalorder %s587_s13, %s883_s1 }
   0x7   :  { %p593_p2 = pnand %p591_p1, %p588_p0 }
   0x9   :  { %596 = shalt.err (!%p593_p2)
}
   0xa   :  { %s597_s18 = scalar_lea.vmem %s35_s10, 128  ;;  %p602_p4 = scmp.lt.s32.totalorder %s35_s10, %s35_s10 }
   0xb   :  { %p598_p3 = scmp.ne.s32.totalorder %s35_s10, %s597_s18  ;;  %p603_p5 = scmp.lt.s32.totalorder %s597_s18, %s597_s18 }
   0xd   :  { %p604_p6 = por %p603_p5, %p602_p4 }
   0xf   :  { %p605_p7 = pnand %p604_p6, %p598_p3 }
  0x11   :  { %608 = shalt.err (!%p605_p7)
}
  0x12   :  { %37 = dma.hbm_to_vmem [thread:$0]  %s883_s1, 128, %s35_s10, [#allocation6]  }
  0x13   :  { %s728_s21 = smov [#allocation8]   ;;  %s729_s23 = smov [#allocation2]  }
  0x14   :  { %s57_s22 = sshll.u32 %s728_s21, 4  ;;  %s24_s24 = sshll.u32 %s729_s23, 4  ;;  %s58_s22 = int_to_ptr.vmem [resolvable:$true] %s57_s22  ;;  %s25_s24 = int_to_ptr.vmem [resolvable:$true] %s24_s24 }
  0x15   :  { %s609_s27 = scalar_lea.hbm %s886_s4, 384 }
  0x16   :  { %p610_p8 = scmp.ne.s32.totalorder %s886_s4, %s609_s27  ;;  %p613_p9 = scmp.lt.u32.totalorder %s609_s27, %s886_s4 }
  0x18   :  { %p615_p10 = pnand %p613_p9, %p610_p8 }
  0x1a   :  { %618 = shalt.err (!%p615_p10)
}
  0x1b   :  { %s619_s1 = scalar_lea.vmem %s58_s22, 384  ;;  %p624_p12 = scmp.lt.s32.totalorder %s58_s22, %s58_s22 }
  0x1c   :  { %p620_p11 = scmp.ne.s32.totalorder %s58_s22, %s619_s1  ;;  %p625_p13 = scmp.lt.s32.totalorder %s619_s1, %s619_s1 }
  0x1e   :  { %p626_p0 = por %p625_p13, %p624_p12 }
  0x20   :  { %p627_p1 = pnand %p626_p0, %p620_p11 }
  0x22   :  { %630 = shalt.err (!%p627_p1)
}
  0x23   :  { %s730_s10 = smov 128   ;;  %s731_s12 = smov 8  }
  0x24   :  { %63 = dma.hbm_to_vmem [thread:$0]  %s886_s4, 384, %s58_s22, [#allocation9], %s730_s10, %s730_s10, %s731_s12  }
  0x25   :  { %s631_s17 = scalar_lea.hbm %s882_s0, 128 }
  0x26   :  { %p632_p2 = scmp.ne.s32.totalorder %s882_s0, %s631_s17  ;;  %p635_p3 = scmp.lt.u32.totalorder %s631_s17, %s882_s0 }
  0x28   :  { %p637_p4 = pnand %p635_p3, %p632_p2 }
  0x2a   :  { %640 = shalt.err (!%p637_p4)
}
  0x2b   :  { %s641_s23 = scalar_lea.vmem %s25_s24, 128  ;;  %p646_p6 = scmp.lt.s32.totalorder %s25_s24, %s25_s24 }
  0x2c   :  { %p642_p5 = scmp.ne.s32.totalorder %s25_s24, %s641_s23  ;;  %p647_p7 = scmp.lt.s32.totalorder %s641_s23, %s641_s23 }
  0x2e   :  { %p648_p8 = por %p647_p7, %p646_p6 }
  0x30   :  { %p649_p9 = pnand %p648_p8, %p642_p5 }
  0x32   :  { %652 = shalt.err (!%p649_p9)
}
  0x33   :  { %27 = dma.hbm_to_vmem [thread:$0]  %s882_s0, 128, %s25_s24, [#allocation3]  }
  0x34   :  { %s732_s25 = smov [#allocation7]   ;;  %s733_s27 = smov [#allocation10]  }
  0x35   :  { %s43_s26 = sshll.u32 %s732_s25, 4  ;;  %s73_s28 = sshll.u32 %s733_s27, 4  ;;  %s44_s26 = int_to_ptr.vmem [resolvable:$true] %s43_s26  ;;  %s74_s28 = int_to_ptr.vmem [resolvable:$true] %s73_s28 }
  0x36   :  { %s653_s11 = scalar_lea.hbm %s884_s2, 256 }
  0x37   :  { %p654_p10 = scmp.ne.s32.totalorder %s884_s2, %s653_s11  ;;  %p657_p11 = scmp.lt.u32.totalorder %s653_s11, %s884_s2 }
  0x39   :  { %p659_p12 = pnand %p657_p11, %p654_p10 }
  0x3b   :  { %662 = shalt.err (!%p659_p12)
}
  0x3c   :  { %s663_s0 = scalar_lea.vmem %s44_s26, 256  ;;  %p668_p0 = scmp.lt.s32.totalorder %s44_s26, %s44_s26 }
  0x3d   :  { %p664_p13 = scmp.ne.s32.totalorder %s44_s26, %s663_s0  ;;  %p669_p1 = scmp.lt.s32.totalorder %s663_s0, %s663_s0 }
  0x3f   :  { %p670_p2 = por %p669_p1, %p668_p0 }
  0x41   :  { %p671_p3 = pnand %p670_p2, %p664_p13 }
  0x43   :  { %674 = shalt.err (!%p671_p3)
}
  0x44   :  { %49 = dma.hbm_to_vmem [thread:$0]  %s884_s2, 256, %s44_s26, [#allocation6], %s730_s10, %s730_s10, %s731_s12  }
  0x45   :  { %s675_s19 = scalar_lea.hbm %s889_s7, 8192 }
  0x46   :  { %p676_p4 = scmp.ne.s32.totalorder %s889_s7, %s675_s19  ;;  %p679_p5 = scmp.lt.u32.totalorder %s675_s19, %s889_s7 }
  0x48   :  { %p681_p6 = pnand %p679_p5, %p676_p4 }
  0x4a   :  { %684 = shalt.err (!%p681_p6)
}
  0x4b   :  { %s685_s22 = scalar_lea.vmem %s74_s28, 8192  ;;  %p690_p8 = scmp.lt.s32.totalorder %s74_s28, %s74_s28 }
  0x4c   :  { %p686_p7 = scmp.ne.s32.totalorder %s74_s28, %s685_s22  ;;  %p691_p9 = scmp.lt.s32.totalorder %s685_s22, %s685_s22 }
  0x4e   :  { %p692_p10 = por %p691_p9, %p690_p8 }
  0x50   :  { %p693_p11 = pnand %p692_p10, %p686_p7 }
  0x52   :  { %696 = shalt.err (!%p693_p11)
}
  0x53   :  { %s734_s2 = smov 256   ;;  %s735_s10 = smov 16  }
  0x54   :  { %79 = dma.hbm_to_vmem [thread:$0]  %s889_s7, 8192, %s74_s28, [#allocation9], %s734_s2, %s734_s2, %s735_s10  }
  0x55   :  { %719 = dma.done.wait [#allocation3], 128  }
  0x56   :  { %720 = vsyncadd [#allocation3], 4294967168 }
  0x57   :  { %721 = dma.done.wait [#allocation6], 384  }
  0x58   :  { %722 = vsyncadd [#allocation6], 4294966912 }
  0x59   :  { %723 = dma.done.wait [#allocation9], 8576  }
  0x5a   :  { %724 = vsyncadd [#allocation9], 4294958720  ;;  %v736_v0 = vmov 0.0|0.0   ;;  %vm737_vm0 = vmmov 0   ;;  %v738_v1 = vmov 0.0   ;;  %v98_v2 = vld [vmem:[#allocation7] sm:$0xff] }
  0x5b   :  { %490 = vmatprep.subr.bf16.mxu1 %v736_v0  ;;  %478 = vmatprep.mubr.msk.f32.mxu1 %vm737_vm0, %v738_v1  ;;  %v99_v3 = vld [vmem:[#allocation7 + $0x8] sm:$0xff]  ;;  %v182_v5 = vld [vmem:[#allocation8] sm:$0xff]  ;;  %v183_v6 = vld [vmem:[#allocation8 + $0x8] sm:$0xff]  ;;  %vm107_vm1 = vcmask 130048   ;;  %vm192_vm2 = vcmask 195584  }
  0x5c   :  { %v491_v4 = vpack.c.bf16 %v99_v3, %v98_v2  ;;  %v97_v7 = vld [vmem:[#allocation2] sm:$0xff]  ;;  %v295_v9 = vld [vmem:[#allocation10 + $0x18] sm:$0xff]  ;;  %v494_v10 = vpack.c.bf16 %v183_v6, %v182_v5  ;;  %v292_v12 = vld [vmem:[#allocation10] sm:$0xff] }
  0x5d   :  { %v293_v8 = vld [vmem:[#allocation10 + $0x8] sm:$0xff]  ;;  %v294_v13 = vld [vmem:[#allocation10 + $0x10] sm:$0xff]  ;;  %v299_v16 = vld [vmem:[#allocation10 + $0x38] sm:$0xff] }
  0x5e   :  { %492 = vmatpush3.bf16.msra.mxu1 %v491_v4  ;;  %v496_v11 = vpack.c.bf16 %v295_v9, %v293_v8  ;;  %v297_v14 = vld [vmem:[#allocation10 + $0x28] sm:$0xff]  ;;  %v498_v15 = vpack.c.bf16 %v294_v13, %v292_v12  ;;  %v296_v17 = vld [vmem:[#allocation10 + $0x20] sm:$0xff]  ;;  %v298_v18 = vld [vmem:[#allocation10 + $0x30] sm:$0xff] }
  0x5f   :  { %493 = vmatprep.subr.bf16.mxu1 %v736_v0  ;;  %v500_v19 = vpack.c.bf16 %v299_v16, %v297_v14  ;;  %v301_v20 = vld [vmem:[#allocation10 + $0x48] sm:$0xff]  ;;  %v303_v21 = vld [vmem:[#allocation10 + $0x58] sm:$0xff]  ;;  %v502_v22 = vpack.c.bf16 %v298_v18, %v296_v17  ;;  %v300_v24 = vld [vmem:[#allocation10 + $0x40] sm:$0xff] }
  0x60   :  { %497 = vmatprep.subr.bf16.mxu0 %v496_v11  ;;  %v504_v23 = vpack.c.bf16 %v303_v21, %v301_v20  ;;  %v302_v25 = vld [vmem:[#allocation10 + $0x50] sm:$0xff]  ;;  %v184_v26 = vld [vmem:[#allocation8 + $0x10] sm:$0xff]  ;;  %v305_v27 = vld [vmem:[#allocation10 + $0x68] sm:$0xff] }
  0x61   :  { %479 = vmatmul.mubr.msk.f32.vlgmr.msra.gmra.mrb[0].mxu1 %vm107_vm1, %v97_v7  ;;  %499 = vmatpush1.bf16.msra.mxu0 %v498_v15  ;;  %v307_v28 = vld [vmem:[#allocation10 + $0x78] sm:$0xff]  ;;  %v181_v29 = vld [vmem:[#allocation5] sm:$0xff]  ;;  %v506_v30 = vpack.c.bf16 %v302_v25, %v300_v24  ;;  %v304_v32 = vld [vmem:[#allocation10 + $0x60] sm:$0xff] }
  0x62   :  { %495 = vmatpush3.bf16.msra.mxu1 %v494_v10  ;;  %487 = vmatprep.mubr.msk.f32.mxu1 %vm737_vm0, %v738_v1  ;;  %v508_v31 = vpack.c.bf16 %v307_v28, %v305_v27  ;;  %v306_v33 = vld [vmem:[#allocation10 + $0x70] sm:$0xff]  ;;  %v309_v34 = vld [vmem:[#allocation10 + $0x88] sm:$0xff]  ;;  %v311_v35 = vld [vmem:[#allocation10 + $0x98] sm:$0xff] }
  0x63   :  { %485 = vmatprep.subr.mxu1 %v738_v1  ;;  %501 = vmatprep.subr.bf16.mxu0 %v500_v19  ;;  %v510_v36 = vpack.c.bf16 %v306_v33, %v304_v32  ;;  %v512_v37 = vpack.c.bf16 %v311_v35, %v309_v34  ;;  %v308_v38 = vld [vmem:[#allocation10 + $0x80] sm:$0xff]  ;;  %v310_v39 = vld [vmem:[#allocation10 + $0x90] sm:$0xff]  ;;  %v313_v40 = vld [vmem:[#allocation10 + $0xa8] sm:$0xff] }
  0x64   :  { %v315_v41 = vld [vmem:[#allocation10 + $0xb8] sm:$0xff]  ;;  %v514_v42 = vpack.c.bf16 %v310_v39, %v308_v38  ;;  %v312_v44 = vld [vmem:[#allocation10 + $0xa0] sm:$0xff]  ;;  %v314_v45 = vld [vmem:[#allocation10 + $0xb0] sm:$0xff] }
  0x65   :  { %503 = vmatpush1.bf16.msra.mxu0 %v502_v22  ;;  %v516_v43 = vpack.c.bf16 %v315_v41, %v313_v40  ;;  %v317_v46 = vld [vmem:[#allocation10 + $0xc8] sm:$0xff]  ;;  %v319_v47 = vld [vmem:[#allocation10 + $0xd8] sm:$0xff]  ;;  %v518_v48 = vpack.c.bf16 %v314_v45, %v312_v44  ;;  %v316_v50 = vld [vmem:[#allocation10 + $0xc0] sm:$0xff] }
  0x66   :  { %486 = vmatpush3.msra.mxu1 %v184_v26  ;;  %505 = vmatprep.subr.bf16.mxu0 %v504_v23  ;;  %v520_v49 = vpack.c.bf16 %v319_v47, %v317_v46  ;;  %v318_v51 = vld [vmem:[#allocation10 + $0xd0] sm:$0xff]  ;;  %v321_v52 = vld [vmem:[#allocation10 + $0xe8] sm:$0xff]  ;;  %v323_v53 = vld [vmem:[#allocation10 + $0xf8] sm:$0xff] }
  0x67   :  { %488 = vmatmul.mubr.msk.f32.vlgmr.msra.gmra.mrb[2].mxu1 %vm192_vm2, %v181_v29  ;;  %v522_v54 = vpack.c.bf16 %v318_v51, %v316_v50  ;;  %v524_v55 = vpack.c.bf16 %v323_v53, %v321_v52  ;;  %v320_v56 = vld [vmem:[#allocation10 + $0xe0] sm:$0xff]  ;;  %v322_v57 = vld [vmem:[#allocation10 + $0xf0] sm:$0xff]  ;;  %v325_v58 = vld [vmem:[#allocation10 + $0x108] sm:$0xff] }
  0x68   :  { %v327_v59 = vld [vmem:[#allocation10 + $0x118] sm:$0xff]  ;;  %v526_v60 = vpack.c.bf16 %v322_v57, %v320_v56  ;;  %v324_v62 = vld [vmem:[#allocation10 + $0x100] sm:$0xff]  ;;  %v326_v63 = vld [vmem:[#allocation10 + $0x110] sm:$0xff] }
  0x69   :  { %507 = vmatpush1.bf16.msra.mxu0 %v506_v30  ;;  %v528_v61 = vpack.c.bf16 %v327_v59, %v325_v58  ;;  %v329_v0 = vld [vmem:[#allocation10 + $0x128] sm:$0xff]  ;;  %v331_v1 = vld [vmem:[#allocation10 + $0x138] sm:$0xff]  ;;  %v530_v2 = vpack.c.bf16 %v326_v63, %v324_v62  ;;  %v328_v4 = vld [vmem:[#allocation10 + $0x120] sm:$0xff]  ;;  %v358_v63 = vlaneseq }
  0x6a   :  { %509 = vmatprep.subr.bf16.mxu0 %v508_v31  ;;  %v532_v3 = vpack.c.bf16 %v331_v1, %v329_v0  ;;  %v330_v5 = vld [vmem:[#allocation10 + $0x130] sm:$0xff]  ;;  %v333_v6 = vld [vmem:[#allocation10 + $0x148] sm:$0xff]  ;;  %v335_v7 = vld [vmem:[#allocation10 + $0x158] sm:$0xff] }
  0x6b   :  { %v534_v8 = vpack.c.bf16 %v330_v5, %v328_v4  ;;  %v536_v9 = vpack.c.bf16 %v335_v7, %v333_v6  ;;  %v332_v10 = vld [vmem:[#allocation10 + $0x140] sm:$0xff]  ;;  %v334_v11 = vld [vmem:[#allocation10 + $0x150] sm:$0xff]  ;;  %v337_v12 = vld [vmem:[#allocation10 + $0x168] sm:$0xff] }
  0x6c   :  { %v339_v13 = vld [vmem:[#allocation10 + $0x178] sm:$0xff]  ;;  %v538_v14 = vpack.c.bf16 %v334_v11, %v332_v10  ;;  %v336_v16 = vld [vmem:[#allocation10 + $0x160] sm:$0xff]  ;;  %v338_v17 = vld [vmem:[#allocation10 + $0x170] sm:$0xff] }
  0x6d   :  { %511 = vmatpush1.bf16.msra.mxu0 %v510_v36  ;;  %v540_v15 = vpack.c.bf16 %v339_v13, %v337_v12  ;;  %v341_v18 = vld [vmem:[#allocation10 + $0x188] sm:$0xff]  ;;  %v343_v19 = vld [vmem:[#allocation10 + $0x198] sm:$0xff]  ;;  %v542_v20 = vpack.c.bf16 %v338_v17, %v336_v16  ;;  %v340_v22 = vld [vmem:[#allocation10 + $0x180] sm:$0xff] }
  0x6e   :  { %513 = vmatprep.subr.bf16.mxu0 %v512_v37  ;;  %v544_v21 = vpack.c.bf16 %v343_v19, %v341_v18  ;;  %v342_v23 = vld [vmem:[#allocation10 + $0x190] sm:$0xff]  ;;  %v345_v24 = vld [vmem:[#allocation10 + $0x1a8] sm:$0xff]  ;;  %v347_v25 = vld [vmem:[#allocation10 + $0x1b8] sm:$0xff] }
  0x6f   :  { %v546_v26 = vpack.c.bf16 %v342_v23, %v340_v22  ;;  %v548_v27 = vpack.c.bf16 %v347_v25, %v345_v24  ;;  %v344_v28 = vld [vmem:[#allocation10 + $0x1a0] sm:$0xff]  ;;  %v346_v29 = vld [vmem:[#allocation10 + $0x1b0] sm:$0xff]  ;;  %v349_v31 = vld [vmem:[#allocation10 + $0x1c8] sm:$0xff] }
  0x70   :  { %v550_v30 = vpack.c.bf16 %v346_v29, %v344_v28  ;;  %v351_v32 = vld [vmem:[#allocation10 + $0x1d8] sm:$0xff]  ;;  %v348_v34 = vld [vmem:[#allocation10 + $0x1c0] sm:$0xff]  ;;  %v350_v35 = vld [vmem:[#allocation10 + $0x1d0] sm:$0xff] }
  0x71   :  { %515 = vmatpush1.bf16.msra.mxu0 %v514_v42  ;;  %v552_v33 = vpack.c.bf16 %v351_v32, %v349_v31  ;;  %v554_v36 = vpack.c.bf16 %v350_v35, %v348_v34  ;;  %v353_v37 = vld [vmem:[#allocation10 + $0x1e8] sm:$0xff]  ;;  %v355_v38 = vld [vmem:[#allocation10 + $0x1f8] sm:$0xff]  ;;  %v352_v40 = vld [vmem:[#allocation10 + $0x1e0] sm:$0xff] }
  0x72   :  { %517 = vmatprep.subr.bf16.mxu0 %v516_v43  ;;  %v556_v39 = vpack.c.bf16 %v355_v38, %v353_v37  ;;  %v354_v41 = vld [vmem:[#allocation10 + $0x1f0] sm:$0xff]  ;;  %v462_v43 = vld [vmem:[%s885_s3] ss:$0 sm:$0xff] }
  0x73   :  { %v558_v42 = vpack.c.bf16 %v354_v41, %v352_v40  ;;  %v464_v47 = vld [vmem:[%s887_s5] ss:$0 sm:$0xff] }
  0x74   :  { %v466_v51 = vld [vmem:[%s888_s6] ss:$0 sm:$0xff]  ;;  %s739_s6 = smov [#allocation11]  }
  0x75   :  { %519 = vmatpush1.bf16.msra.mxu0 %v518_v48  ;;  %v356_v5 = vld [vmem:[%s890_s8] sm:$0x3]  ;;  %s451_s11 = sshll.u32 %s739_s6, 4  ;;  %s452_s11 = int_to_ptr.vmem [resolvable:$true] %s451_s11 }
  0x76   :  { %521 = vmatprep.subr.bf16.mxu0 %v520_v49  ;;  %s697_s8 = scalar_lea.vmem %s452_s11, 128  ;;  %p702_p13 = scmp.lt.s32.totalorder %s452_s11, %s452_s11 }
  0x77   :  { %p698_p12 = scmp.ne.s32.totalorder %s452_s11, %s697_s8  ;;  %p703_p0 = scmp.lt.s32.totalorder %s697_s8, %s697_s8 }
  0x79   :  { %523 = vmatpush1.bf16.msra.mxu0 %v522_v54  ;;  %p704_p1 = por %p703_p0, %p702_p13 }
  0x7a   :  { %525 = vmatprep.subr.bf16.mxu0 %v524_v55 }
  0x7b   :  { %p705_p2 = pnand %p704_p1, %p698_p12 }
  0x7d   :  { %527 = vmatpush1.bf16.msra.mxu0 %v526_v60 }
  0x7e   :  { %529 = vmatprep.subr.bf16.mxu0 %v528_v61 }
  0x81   :  { %531 = vmatpush1.bf16.msra.mxu0 %v530_v2  ;;  %v359_v2 = vshrl.u32 %v358_v63, 7 }
  0x82   :  { %533 = vmatprep.subr.bf16.mxu0 %v532_v3 }
  0x83   :  { %v360_v4 = vsub.s32 0, %v359_v2  ;;  %v364_v6 = vsub.s32 1, %v359_v2 }
  0x85   :  { %535 = vmatpush1.bf16.msra.mxu0 %v534_v8  ;;  %v361_v7 = vrot.slane %v356_v5, %v360_v4  ;;  %v365_v8 = vrot.slane %v356_v5, %v364_v6 }
  0x86   :  { %537 = vmatprep.subr.bf16.mxu0 %v536_v9 }
  0x89   :  { %539 = vmatpush1.bf16.msra.mxu0 %v538_v14 }
  0x8a   :  { %541 = vmatprep.subr.bf16.mxu0 %v540_v15 }
  0x8d   :  { %543 = vmatpush1.bf16.msra.mxu0 %v542_v20 }
  0x8e   :  { %545 = vmatprep.subr.bf16.mxu0 %v544_v21 }
  0x91   :  { %547 = vmatpush1.bf16.msra.mxu0 %v546_v26 }
  0x92   :  { %549 = vmatprep.subr.bf16.mxu0 %v548_v27 }
  0x95   :  { %551 = vmatpush1.bf16.msra.mxu0 %v550_v30 }
  0x96   :  { %553 = vmatprep.subr.bf16.mxu0 %v552_v33 }
  0x99   :  { %555 = vmatpush1.bf16.msra.mxu0 %v554_v36 }
  0x9a   :  { %557 = vmatprep.subr.bf16.mxu0 %v556_v39 }
  0x9d   :  { %559 = vmatpush1.bf16.msra.mxu0 %v558_v42 }
 0x134   :  { %v177_v44 = vpop.f32.mrb[0].mxu1 }
 0x135   :  { %v178_v45 = vadd.f32 %v462_v43, %v177_v44  ;;  %v480_v46 = vpop.f32.mrb[1].mxu1 }
 0x137   :  { %573 = vtanh.f32 %v178_v45 }
 0x13a   :  { %v262_v48 = vpop.f32.mrb[2].mxu1 }
 0x13b   :  { %v263_v49 = vadd.f32 %v464_v47, %v262_v48  ;;  %v489_v50 = vpop.f32.mrb[3].mxu1 }
 0x13d   :  { %575 = vtanh.f32 %v263_v49  ;;  %432 = vmatprep.mubr.f32.mxu0 %v263_v49 }
 0x13e   :  { %433 = vmatmul.mubr.f32.vlgmr.msra.gmra.mrb[0].mxu0 %v178_v45 }
 0x141   :  { %v574_v52 = vpop.eup %573 }
 0x142   :  { %v274_v53 = vmul.f32 %v574_v52, %v466_v51 }
 0x144   :  { %275 = vadd.xlane.f32.xlu0 %v274_v53 }
 0x147   :  { %v576_v54 = vpop.eup %575 }
 0x148   :  { %v278_v55 = vmul.f32 %v576_v54, %v466_v51 }
 0x14a   :  { %279 = vadd.xlane.f32.xlu0 %v278_v55 }
 0x1d1   :  { %v276_v56 = vpop.xlane.xlu0 %275 }
 0x1d7   :  { %v280_v57 = vpop.xlane.xlu0 %279 }
 0x1d8   :  { %v281_v58 = vmax.f32 %v276_v56, %v280_v57 }
 0x1da   :  { %v282_v59 = vsub.f32 %v276_v56, %v281_v58  ;;  %v285_v60 = vsub.f32 %v280_v57, %v281_v58 }
 0x1dc   :  { %v283_v61 = vmul.f32 1.442695, %v282_v59  ;;  %v286_v62 = vmul.f32 1.442695, %v285_v60 }
 0x1de   :  { %577 = vpow2.f32 %v283_v61 }
 0x1df   :  { %579 = vpow2.f32 %v286_v62 }
 0x1e8   :  { %v578_v0 = vpop.eup %577 }
 0x1e9   :  { %v580_v1 = vpop.eup %579 }
 0x1ea   :  { %v288_v3 = vadd.f32 %v580_v1, %v578_v0 }
 0x1ec   :  { %581 = vrcp.f32 %v288_v3 }
 0x1f6   :  { %v582_v13 = vpop.eup %581 }
 0x1f7   :  { %v290_v14 = vmul.f32 %v582_v13, %v578_v0 }
 0x1f9   :  { %v291_v16 = vsub.f32 1.0, %v290_v14 }
 0x211   :  { %v434_v9 = vpop.f32.mrb[0].mxu0 }
 0x212   :  { %v435_v10 = vadd.f32 %v434_v9, %v361_v7  ;;  %v436_v11 = vpop.f32.mrb[1].mxu0 }
 0x213   :  { %v437_v12 = vadd.f32 %v436_v11, %v365_v8 }
 0x214   :  { %583 = vtanh.f32 %v435_v10 }
 0x215   :  { %585 = vtanh.f32 %v437_v12 }
 0x21e   :  { %v584_v15 = vpop.eup %583 }
 0x21f   :  { %v586_v17 = vpop.eup %585  ;;  %v441_v18 = vmul.f32 %v584_v15, %v290_v14 }
 0x220   :  { %v442_v19 = vmul.f32 %v586_v17, %v291_v16 }
 0x222   :  { %v443_v20 = vadd.f32 %v442_v19, %v441_v18 }
 0x224   :  { %444 = vst [vmem:[#allocation11] sm:$0xff] %v443_v20 }
 0x225   :  { %708 = shalt.err (!%p705_p2)
}
 0x226   :  { %s709_s14 = scalar_lea.hbm %s891_s9, 128 }
 0x227   :  { %p710_p3 = scmp.ne.s32.totalorder %s891_s9, %s709_s14  ;;  %p713_p4 = scmp.lt.u32.totalorder %s709_s14, %s891_s9 }
 0x229   :  { %p715_p5 = pnand %p713_p4, %p710_p3 }
 0x22b   :  { %718 = shalt.err (!%p715_p5)
}
 0x22c   :  { %454 = dma.vmem_to_hbm [thread:$0]  %s452_s11, 128, %s891_s9, [#allocation4]  }
 0x22d   :  { %725 = dma.done.wait [#allocation4], 128  }
 0x22e   :  { %726 = vsyncadd [#allocation4], 4294967168 }
 0x22f   :  { %458 = vsyncpa [#allocation3], 1 }
 0x230   :  { %459 = vsyncpa [#allocation6], 1 }
 0x231   :  { %460 = vsyncpa [#allocation9], 1 }
 0x232   :  { %461 = vsyncpa [#allocation4], 1 }

</bundles_post_ra>
